<compile_context>
chip_gen: v7x
topology: tpu7x:2x2x1
jax: 0.10.0
libtpu: 0.0.40
codegen_flags: <defaults>
</compile_context>

<pallas_src>
import functools

import jax
import jax.numpy as jnp
from jax.experimental import pallas as pl
from jax.experimental.pallas import tpu as pltpu


def _round_up(x, m):
    return (x + m - 1) // m * m


def _geglu_kernel(x_ref, w_ref, b_ref, o_ref):
    # x_ref: (tm, dim_in)     compute dtype (bf16 by default)
    # w_ref: (2, tn, dim_in)  torch Linear layout [value_half, gate_half]
    # b_ref: (2, 1, tn)       float32
    # o_ref: (tm, tn)         output dtype (x.dtype)
    x = x_ref[...]
    # Contract x's last dim against w's last dim -> no transposed weight needed.
    contract = (((1,), (1,)), ((), ()))
    h = jax.lax.dot_general(x, w_ref[0], contract,
                            preferred_element_type=jnp.float32) + b_ref[0]
    g = jax.lax.dot_general(x, w_ref[1], contract,
                            preferred_element_type=jnp.float32) + b_ref[1]
    # Exact (erf) GELU in f32, matching torch.nn.functional.gelu's default.
    gelu_g = 0.5 * g * (1.0 + jax.lax.erf(g * jnp.float32(0.7071067811865476)))
    o_ref[...] = (h * gelu_g).astype(o_ref.dtype)


@functools.partial(jax.jit, static_argnames=("tm", "tn", "compute_dtype"))
def geglu(x, w, b, *, tm=256, tn=256, compute_dtype=jnp.bfloat16):
    """GEGLU forward.

    x: (B, S, dim_in); w: (2*dim_out, dim_in) torch Linear weight; b: (2*dim_out,).
    Returns (B, S, dim_out) in x.dtype.
    """
    B, S, dim_in = x.shape
    two_dim_out, w_dim_in = w.shape
    assert w_dim_in == dim_in and two_dim_out % 2 == 0
    dim_out = two_dim_out // 2
    M = B * S

    # Tile sizes: clamp to the (padded) problem, keep sublane (8) / lane (128) alignment.
    tm = max(8, min(tm, _round_up(M, 8)))
    tn = max(128, min(tn, _round_up(dim_out, 128)))
    m_pad = _round_up(M, tm)
    n_pad = _round_up(dim_out, tn)

    # Param massaging: pure reshape (no transpose / extra HBM pass over the weights).
    # torch layout (2*dim_out, dim_in) -> (2, dim_out, dim_in); halves = [value, gate].
    w_f = w.reshape(2, dim_out, dim_in).astype(compute_dtype)
    b_f = b.reshape(2, 1, dim_out).astype(jnp.float32)
    if n_pad != dim_out:
        w_f = jnp.pad(w_f, ((0, 0), (0, n_pad - dim_out), (0, 0)))
        b_f = jnp.pad(b_f, ((0, 0), (0, 0), (0, n_pad - dim_out)))

    x2d = x.reshape(M, dim_in).astype(compute_dtype)
    if m_pad != M:
        x2d = jnp.pad(x2d, ((0, m_pad - M), (0, 0)))

    # VMEM budget estimate (double-buffered blocks + headroom); raise the scoped limit
    # above the 16/32 MiB defaults but stay well under v7x's 64 MiB per-TC VMEM.
    isz = jnp.dtype(compute_dtype).itemsize
    osz = jnp.dtype(x.dtype).itemsize
    blk_bytes = (tm * dim_in * isz          # x tile
                 + 2 * tn * dim_in * isz    # both weight-half tiles
                 + 2 * tn * 4               # bias tile
                 + tm * tn * osz)           # output tile
    vmem_limit = int(min(max(3 * blk_bytes, 32 * 2**20), 60 * 2**20))

    out2d = pl.pallas_call(
        _geglu_kernel,
        out_shape=jax.ShapeDtypeStruct((m_pad, n_pad), x.dtype),
        grid_spec=pltpu.PrefetchScalarGridSpec(
            num_scalar_prefetch=0,
            grid=(m_pad // tm, n_pad // tn),
            in_specs=[
                pl.BlockSpec((tm, dim_in), lambda i, j: (i, 0)),
                pl.BlockSpec((2, tn, dim_in), lambda i, j: (0, j, 0)),
                pl.BlockSpec((2, 1, tn), lambda i, j: (0, 0, j)),
            ],
            out_specs=pl.BlockSpec((tm, tn), lambda i, j: (i, j)),
        ),
        compiler_params=pltpu.CompilerParams(
            dimension_semantics=("parallel", "parallel"),
            vmem_limit_bytes=vmem_limit,
        ),
    )(x2d, w_f, b_f)

    # TODO(synk): for very large dim_in, add a K grid axis ("arbitrary") with an f32 VMEM
    # accumulator; with full-K blocks the working set is already small for typical dims.
    return out2d[:M, :dim_out].reshape(B, S, dim_out)


def geglu_reference(x, w, b):
    """Pure-JAX reference matching the PyTorch module semantics (f32, exact erf GELU)."""
    y = jnp.einsum("bsi,oi->bso", x, w, precision=jax.lax.Precision.HIGHEST) + b
    dim_out = w.shape[0] // 2
    h, g = y[..., :dim_out], y[..., dim_out:]
    return h * (0.5 * g * (1.0 + jax.lax.erf(g * 0.7071067811865476)))


if __name__ == "__main__":
    key = jax.random.PRNGKey(0)
    k_x, k_w, k_b = jax.random.split(key, 3)

    batch, seq, dim_in, dim_out = 2, 64, 128, 128

    x = jax.random.normal(k_x, (batch, seq, dim_in), dtype=jnp.float32)
    # Deterministic Linear-style init: U(-1/sqrt(dim_in), 1/sqrt(dim_in)).
    bound = 1.0 / jnp.sqrt(jnp.float32(dim_in))
    w = jax.random.uniform(k_w, (2 * dim_out, dim_in), jnp.float32, -bound, bound)
    b = jax.random.uniform(k_b, (2 * dim_out,), jnp.float32, -bound, bound)

    ref = geglu_reference(x, w, b)

    # 1) f32 datapath: matches the PyTorch-semantics reference tightly.
    out_f32 = jax.block_until_ready(geglu(x, w, b, compute_dtype=jnp.float32))
    assert out_f32.shape == (batch, seq, dim_out)
    assert jnp.allclose(out_f32, ref, atol=5e-5, rtol=5e-5)

    # 2) Default bf16 datapath (f32 accumulation): compare against a reference computed
    #    on identically bf16-rounded inputs (same quantization, f32 math).
    out_bf16 = jax.block_until_ready(geglu(x, w, b))
    ref_q = geglu_reference(
        x.astype(jnp.bfloat16).astype(jnp.float32),
        w.astype(jnp.bfloat16).astype(jnp.float32),
        b,
    )
    assert out_bf16.shape == (batch, seq, dim_out)
    assert jnp.allclose(out_bf16, ref_q, atol=2e-3, rtol=2e-3)

    print("KERNEL_OK")
</pallas_src>

<mosaic_0001>
module attributes {stable_mosaic.version = 11 : i64} {
  func.func @_geglu_kernel(%arg0: i32, %arg1: i32, %arg2: memref<128x128xf32, #tpu.memory_space<vmem>>, %arg3: memref<2x128x128xf32, #tpu.memory_space<vmem>>, %arg4: memref<2x1x128xf32, #tpu.memory_space<vmem>>, %arg5: memref<128x128xf32, #tpu.memory_space<vmem>>) attributes {dimension_semantics = [#tpu.dimension_semantics<parallel>, #tpu.dimension_semantics<parallel>], iteration_bounds = array<i64: 1, 1>, scalar_prefetch = 0 : i64, scratch_operands = 0 : i64, tpu.core_type = #tpu.core_type<tc>, window_params = [{transform_indices = @transform_0, window_bounds = array<i64: 128, 128>}, {transform_indices = @transform_1, window_bounds = array<i64: 2, 128, 128>}, {transform_indices = @transform_2, window_bounds = array<i64: 2, 1, 128>}, {transform_indices = @transform_3, window_bounds = array<i64: 128, 128>}]} {
    %c0 = arith.constant 0 : index
    %c0_0 = arith.constant 0 : index
    %0 = vector.load %arg2[%c0, %c0_0] : memref<128x128xf32, #tpu.memory_space<vmem>>, vector<128x128xf32>
    %c0_1 = arith.constant 0 : index
    %c0_2 = arith.constant 0 : index
    %c0_3 = arith.constant 0 : index
    %1 = vector.load %arg3[%c0_1, %c0_2, %c0_3] : memref<2x128x128xf32, #tpu.memory_space<vmem>>, vector<1x128x128xf32>
    %2 = vector.shape_cast %1 : vector<1x128x128xf32> to vector<128x128xf32>
    %cst = arith.constant dense<0.000000e+00> : vector<128x128xf32>
    %3 = tpu.matmul %0, %2, %cst {dimension_numbers = #tpu.dot_dimension_numbers<[1], [1], [0], [0], [0, 0, 1, 0], [], []>} : vector<128x128xf32>, vector<128x128xf32>, vector<128x128xf32> -> vector<128x128xf32>
    %c0_4 = arith.constant 0 : index
    %c0_5 = arith.constant 0 : index
    %c0_6 = arith.constant 0 : index
    %4 = vector.load %arg4[%c0_4, %c0_5, %c0_6] : memref<2x1x128xf32, #tpu.memory_space<vmem>>, vector<1x1x128xf32>
    %5 = vector.shape_cast %4 : vector<1x1x128xf32> to vector<1x128xf32>
    %6 = vector.broadcast %5 : vector<1x128xf32> to vector<128x128xf32>
    %7 = arith.addf %3, %6 : vector<128x128xf32>
    %c1 = arith.constant 1 : index
    %c0_7 = arith.constant 0 : index
    %c0_8 = arith.constant 0 : index
    %8 = vector.load %arg3[%c1, %c0_7, %c0_8] : memref<2x128x128xf32, #tpu.memory_space<vmem>>, vector<1x128x128xf32>
    %9 = vector.shape_cast %8 : vector<1x128x128xf32> to vector<128x128xf32>
    %cst_9 = arith.constant dense<0.000000e+00> : vector<128x128xf32>
    %10 = tpu.matmul %0, %9, %cst_9 {dimension_numbers = #tpu.dot_dimension_numbers<[1], [1], [0], [0], [0, 0, 1, 0], [], []>} : vector<128x128xf32>, vector<128x128xf32>, vector<128x128xf32> -> vector<128x128xf32>
    %c1_10 = arith.constant 1 : index
    %c0_11 = arith.constant 0 : index
    %c0_12 = arith.constant 0 : index
    %11 = vector.load %arg4[%c1_10, %c0_11, %c0_12] : memref<2x1x128xf32, #tpu.memory_space<vmem>>, vector<1x1x128xf32>
    %12 = vector.shape_cast %11 : vector<1x1x128xf32> to vector<1x128xf32>
    %13 = vector.broadcast %12 : vector<1x128xf32> to vector<128x128xf32>
    %14 = arith.addf %10, %13 : vector<128x128xf32>
    %cst_13 = arith.constant 5.000000e-01 : f32
    %15 = vector.broadcast %cst_13 : f32 to vector<128x128xf32>
    %16 = arith.mulf %15, %14 : vector<128x128xf32>
    %cst_14 = arith.constant 0.707106769 : f32
    %17 = vector.broadcast %cst_14 : f32 to vector<128x128xf32>
    %18 = arith.mulf %14, %17 : vector<128x128xf32>
    %19 = math.erf %18 : vector<128x128xf32>
    %cst_15 = arith.constant 1.000000e+00 : f32
    %20 = vector.broadcast %cst_15 : f32 to vector<128x128xf32>
    %21 = arith.addf %20, %19 : vector<128x128xf32>
    %22 = arith.mulf %16, %21 : vector<128x128xf32>
    %23 = arith.mulf %7, %22 : vector<128x128xf32>
    %c0_16 = arith.constant 0 : index
    %c0_17 = arith.constant 0 : index
    %24 = vector.load %arg5[%c0_16, %c0_17] : memref<128x128xf32, #tpu.memory_space<vmem>>, vector<128x128xf32>
    tpu.vector_store %arg5[%c0_16, %c0_17], %23 {strides = array<i32>} : memref<128x128xf32, #tpu.memory_space<vmem>>, vector<128x128xf32>,
    return
  }
  func.func @transform_0(%arg0: i32, %arg1: i32) -> (i32, i32) {
    %c0_i32 = arith.constant 0 : i32
    %c0_i32_0 = arith.constant 0 : i32
    return %arg0, %c0_i32 : i32, i32
  }
  func.func @transform_1(%arg0: i32, %arg1: i32) -> (i32, i32, i32) {
    %c0_i32 = arith.constant 0 : i32
    %c0_i32_0 = arith.constant 0 : i32
    %c0_i32_1 = arith.constant 0 : i32
    return %c0_i32, %arg1, %c0_i32_0 : i32, i32, i32
  }
  func.func @transform_2(%arg0: i32, %arg1: i32) -> (i32, i32, i32) {
    %c0_i32 = arith.constant 0 : i32
    %c0_i32_0 = arith.constant 0 : i32
    %c0_i32_1 = arith.constant 0 : i32
    return %c0_i32, %c0_i32_0, %arg1 : i32, i32, i32
  }
  func.func @transform_3(%arg0: i32, %arg1: i32) -> (i32, i32) {
    %c0_i32 = arith.constant 0 : i32
    return %arg0, %arg1 : i32, i32
  }
}

</mosaic_0001>

<bundles_post_ra>
// kernel: geglu.1
= control target key start
LH: loop header
LB: loop body
LE: loop exit
PB: predicated region body
PF: predicated region fallthrough
CT: control target
= control target key end

     0   :  { %8 = vsyncpa [#allocation3], 0  ;;  %s1051_s0 = inlined_call_operand.hbm [shape: f32[128,128], index: 0, kind: input, shape index: {}]   ;;  %s1052_s1 = inlined_call_operand.hbm [shape: f32[2,128,128], index: 1, kind: input, shape index: {}]   ;;  %s1053_s2 = inlined_call_operand.vmem [shape: f32[2,1,128], index: 2, kind: input, shape index: {}]   ;;  %s1054_s3 = inlined_call_operand.hbm [shape: f32[128,128], index: 3, kind: output, shape index: {}]  }
   0x1   :  { %9 = vsyncpa [#allocation6], 0 }
   0x2   :  { %10 = vsyncpa [#allocation4], 0  ;;  %s879_s12 = smov [#allocation2]   ;;  %s807_s16 = scalar_lea.hbm %s1051_s0, 2048 }
   0x3   :  { %s16_s13 = sshll.u32 %s879_s12, 4  ;;  %p808_p0 = scmp.ne.s32.totalorder %s1051_s0, %s807_s16  ;;  %s17_s13 = int_to_ptr.vmem [resolvable:$true] %s16_s13 }
   0x4   :  { %p811_p1 = scmp.lt.u32.totalorder %s807_s16, %s1051_s0 }
   0x6   :  { %p813_p2 = pnand %p811_p1, %p808_p0 }
   0x8   :  { %816 = shalt.err (!%p813_p2)
}
   0x9   :  { %s817_s21 = scalar_lea.vmem %s17_s13, 2048  ;;  %p822_p4 = scmp.lt.s32.totalorder %s17_s13, %s17_s13 }
   0xa   :  { %p818_p3 = scmp.ne.s32.totalorder %s17_s13, %s817_s21  ;;  %p823_p5 = scmp.lt.s32.totalorder %s817_s21, %s817_s21 }
   0xc   :  { %p824_p6 = por %p823_p5, %p822_p4 }
   0xe   :  { %p825_p7 = pnand %p824_p6, %p818_p3 }
  0x10   :  { %828 = shalt.err (!%p825_p7)
}
  0x11   :  { %s880_s22 = smov 128   ;;  %s881_s23 = smov 8  }
  0x12   :  { %22 = dma.hbm_to_vmem [thread:$0]  %s1051_s0, 2048, %s17_s13, [#allocation3], %s880_s22, %s880_s22, %s881_s23  }
  0x13   :  { %s882_s26 = smov [#allocation5]   ;;  %s829_s30 = scalar_lea.hbm %s1052_s1, 4096 }
  0x14   :  { %s28_s27 = sshll.u32 %s882_s26, 4  ;;  %p830_p8 = scmp.ne.s32.totalorder %s1052_s1, %s829_s30  ;;  %s29_s27 = int_to_ptr.vmem [resolvable:$true] %s28_s27 }
  0x15   :  { %p833_p9 = scmp.lt.u32.totalorder %s829_s30, %s1052_s1 }
  0x17   :  { %p835_p10 = pnand %p833_p9, %p830_p8 }
  0x19   :  { %838 = shalt.err (!%p835_p10)
}
  0x1a   :  { %s839_s8 = scalar_lea.vmem %s29_s27, 4096  ;;  %p844_p12 = scmp.lt.s32.totalorder %s29_s27, %s29_s27 }
  0x1b   :  { %p840_p11 = scmp.ne.s32.totalorder %s29_s27, %s839_s8  ;;  %p845_p13 = scmp.lt.s32.totalorder %s839_s8, %s839_s8 }
  0x1d   :  { %p846_p0 = por %p845_p13, %p844_p12 }
  0x1f   :  { %p847_p1 = pnand %p846_p0, %p840_p11 }
  0x21   :  { %850 = shalt.err (!%p847_p1)
}
  0x22   :  { %34 = dma.hbm_to_vmem [thread:$0]  %s1052_s1, 4096, %s29_s27, [#allocation6], %s880_s22, %s880_s22, %s881_s23  }
  0x23   :  { %873 = dma.done.wait [#allocation3], 2048  }
  0x24   :  { %874 = vsyncadd [#allocation3], 4294965248 }
  0x25   :  { %875 = dma.done.wait [#allocation6], 4096  }
  0x26   :  { %876 = vsyncadd [#allocation6], 4294963200  ;;  %v228_v0 = vld [vmem:[#allocation5 + $0x80] sm:$0xff]  ;;  %v229_v1 = vld [vmem:[#allocation5 + $0x88] sm:$0xff] }
  0x27   :  { %v230_v2 = vld [vmem:[#allocation5 + $0x90] sm:$0xff]  ;;  %v738_v3 = vpack.c.bf16 %v229_v1, %v228_v0  ;;  %v231_v4 = vld [vmem:[#allocation5 + $0x98] sm:$0xff]  ;;  %v59_v5 = vld [vmem:[#allocation5] sm:$0xff] }
  0x28   :  { %v60_v6 = vld [vmem:[#allocation5 + $0x8] sm:$0xff]  ;;  %v742_v7 = vpack.c.bf16 %v231_v4, %v230_v2  ;;  %v61_v9 = vld [vmem:[#allocation5 + $0x10] sm:$0xff]  ;;  %v62_v10 = vld [vmem:[#allocation5 + $0x18] sm:$0xff] }
  0x29   :  { %v706_v8 = vpack.c.bf16 %v60_v6, %v59_v5  ;;  %739 = vmatprep.subr.bf16.mxu1 %v738_v3  ;;  %v710_v11 = vpack.c.bf16 %v62_v10, %v61_v9  ;;  %v232_v12 = vld [vmem:[#allocation5 + $0xa0] sm:$0xff]  ;;  %v233_v13 = vld [vmem:[#allocation5 + $0xa8] sm:$0xff]  ;;  %v234_v19 = vld [vmem:[#allocation5 + $0xb0] sm:$0xff] }
  0x2a   :  { %741 = vmatpush3.bf16.xpose.msra.mxu1 %v738_v3  ;;  %v63_v14 = vld [vmem:[#allocation5 + $0x20] sm:$0xff]  ;;  %v64_v15 = vld [vmem:[#allocation5 + $0x28] sm:$0xff]  ;;  %v746_v16 = vpack.c.bf16 %v233_v13, %v232_v12  ;;  %v235_v20 = vld [vmem:[#allocation5 + $0xb8] sm:$0xff] }
  0x2b   :  { %707 = vmatprep.subr.bf16.mxu0 %v706_v8  ;;  %743 = vmatprep.subr.bf16.mxu1 %v742_v7  ;;  %v43_v17 = vld [vmem:[#allocation2] sm:$0xff]  ;;  %v714_v18 = vpack.c.bf16 %v64_v15, %v63_v14  ;;  %v65_v21 = vld [vmem:[#allocation5 + $0x30] sm:$0xff]  ;;  %v66_v22 = vld [vmem:[#allocation5 + $0x38] sm:$0xff]  ;;  %v750_v23 = vpack.c.bf16 %v235_v20, %v234_v19 }
  0x2c   :  { %709 = vmatpush3.bf16.xpose.msra.mxu0 %v706_v8  ;;  %682 = vmatprep.mubr.f32.mxu1 %v43_v17  ;;  %v718_v24 = vpack.c.bf16 %v66_v22, %v65_v21  ;;  %v236_v25 = vld [vmem:[#allocation5 + $0xc0] sm:$0xff]  ;;  %v237_v26 = vld [vmem:[#allocation5 + $0xc8] sm:$0xff]  ;;  %v238_v31 = vld [vmem:[#allocation5 + $0xd0] sm:$0xff] }
  0x2d   :  { %711 = vmatprep.subr.bf16.mxu0 %v710_v11  ;;  %626 = vmatprep.mubr.f32.mxu0 %v43_v17  ;;  %v67_v27 = vld [vmem:[#allocation5 + $0x40] sm:$0xff]  ;;  %v68_v28 = vld [vmem:[#allocation5 + $0x48] sm:$0xff]  ;;  %v754_v29 = vpack.c.bf16 %v237_v26, %v236_v25  ;;  %v239_v32 = vld [vmem:[#allocation5 + $0xd8] sm:$0xff] }
  0x2e   :  { %v722_v30 = vpack.c.bf16 %v68_v28, %v67_v27  ;;  %v69_v33 = vld [vmem:[#allocation5 + $0x50] sm:$0xff]  ;;  %v70_v34 = vld [vmem:[#allocation5 + $0x58] sm:$0xff]  ;;  %v758_v35 = vpack.c.bf16 %v239_v32, %v238_v31  ;;  %v240_v37 = vld [vmem:[#allocation5 + $0xe0] sm:$0xff] }
  0x2f   :  { %v726_v36 = vpack.c.bf16 %v70_v34, %v69_v33  ;;  %v241_v38 = vld [vmem:[#allocation5 + $0xe8] sm:$0xff]  ;;  %v71_v39 = vld [vmem:[#allocation5 + $0x60] sm:$0xff]  ;;  %v242_v43 = vld [vmem:[#allocation5 + $0xf0] sm:$0xff] }
  0x30   :  { %v72_v40 = vld [vmem:[#allocation5 + $0x68] sm:$0xff]  ;;  %v762_v41 = vpack.c.bf16 %v241_v38, %v240_v37  ;;  %v243_v44 = vld [vmem:[#allocation5 + $0xf8] sm:$0xff]  ;;  %v73_v45 = vld [vmem:[#allocation5 + $0x70] sm:$0xff] }
  0x31   :  { %v730_v42 = vpack.c.bf16 %v72_v40, %v71_v39  ;;  %v74_v46 = vld [vmem:[#allocation5 + $0x78] sm:$0xff]  ;;  %v766_v47 = vpack.c.bf16 %v243_v44, %v242_v43  ;;  %v44_v49 = vld [vmem:[#allocation2 + $0x8] sm:$0xff]  ;;  %v45_v50 = vld [vmem:[#allocation2 + $0x10] sm:$0xff] }
  0x32   :  { %745 = vmatpush3.bf16.xpose.msra.mxu1 %v742_v7  ;;  %v734_v48 = vpack.c.bf16 %v74_v46, %v73_v45  ;;  %v46_v51 = vld [vmem:[#allocation2 + $0x18] sm:$0xff]  ;;  %v47_v52 = vld [vmem:[#allocation2 + $0x20] sm:$0xff]  ;;  %v48_v53 = vld [vmem:[#allocation2 + $0x28] sm:$0xff] }
  0x33   :  { %747 = vmatprep.subr.bf16.mxu1 %v746_v16  ;;  %v49_v54 = vld [vmem:[#allocation2 + $0x30] sm:$0xff]  ;;  %v50_v55 = vld [vmem:[#allocation2 + $0x38] sm:$0xff]  ;;  %v51_v56 = vld [vmem:[#allocation2 + $0x40] sm:$0xff] }
  0x34   :  { %713 = vmatpush3.bf16.xpose.msra.mxu0 %v710_v11  ;;  %v52_v57 = vld [vmem:[#allocation2 + $0x48] sm:$0xff]  ;;  %v53_v58 = vld [vmem:[#allocation2 + $0x50] sm:$0xff]  ;;  %v54_v59 = vld [vmem:[#allocation2 + $0x58] sm:$0xff] }
  0x35   :  { %715 = vmatprep.subr.bf16.mxu0 %v714_v18  ;;  %v55_v60 = vld [vmem:[#allocation2 + $0x60] sm:$0xff]  ;;  %v56_v61 = vld [vmem:[#allocation2 + $0x68] sm:$0xff]  ;;  %v57_v62 = vld [vmem:[#allocation2 + $0x70] sm:$0xff] }
  0x36   :  { %v58_v63 = vld [vmem:[#allocation2 + $0x78] sm:$0xff]  ;;  %v937_v0 = vld [vmem:[%s1053_s2 + $0x1] ss:$0 sm:$0xff]  ;;  %v951_v26 = vld [vmem:[%s1053_s2] ss:$0 sm:$0xff]  ;;  %s883_s2 = smov [#allocation7]  }
  0x37   :  { %s514_s13 = sshll.u32 %s883_s2, 4  ;;  %s515_s13 = int_to_ptr.vmem [resolvable:$true] %s514_s13 }
  0x38   :  { %s851_s14 = scalar_lea.vmem %s515_s13, 2048  ;;  %p856_p3 = scmp.lt.s32.totalorder %s515_s13, %s515_s13 }
  0x39   :  { %p852_p2 = scmp.ne.s32.totalorder %s515_s13, %s851_s14  ;;  %p857_p4 = scmp.lt.s32.totalorder %s851_s14, %s851_s14 }
  0x3a   :  { %749 = vmatpush3.bf16.xpose.msra.mxu1 %v746_v16 }
  0x3b   :  { %751 = vmatprep.subr.bf16.mxu1 %v750_v23  ;;  %p858_p5 = por %p857_p4, %p856_p3 }
  0x3c   :  { %717 = vmatpush3.bf16.xpose.msra.mxu0 %v714_v18 }
  0x3d   :  { %719 = vmatprep.subr.bf16.mxu0 %v718_v24  ;;  %p859_p6 = pnand %p858_p5, %p852_p2 }
  0x42   :  { %753 = vmatpush3.bf16.xpose.msra.mxu1 %v750_v23 }
  0x43   :  { %755 = vmatprep.subr.bf16.mxu1 %v754_v29 }
  0x44   :  { %721 = vmatpush3.bf16.xpose.msra.mxu0 %v718_v24 }
  0x45   :  { %723 = vmatprep.subr.bf16.mxu0 %v722_v30 }
  0x4a   :  { %757 = vmatpush3.bf16.xpose.msra.mxu1 %v754_v29 }
  0x4b   :  { %759 = vmatprep.subr.bf16.mxu1 %v758_v35 }
  0x4c   :  { %725 = vmatpush3.bf16.xpose.msra.mxu0 %v722_v30 }
  0x4d   :  { %727 = vmatprep.subr.bf16.mxu0 %v726_v36 }
  0x52   :  { %761 = vmatpush3.bf16.xpose.msra.mxu1 %v758_v35 }
  0x53   :  { %763 = vmatprep.subr.bf16.mxu1 %v762_v41 }
  0x54   :  { %729 = vmatpush3.bf16.xpose.msra.mxu0 %v726_v36 }
  0x55   :  { %731 = vmatprep.subr.bf16.mxu0 %v730_v42 }
  0x5a   :  { %765 = vmatpush3.bf16.xpose.msra.mxu1 %v762_v41 }
  0x5b   :  { %767 = vmatprep.subr.bf16.mxu1 %v766_v47 }
  0x5c   :  { %733 = vmatpush3.bf16.xpose.msra.mxu0 %v730_v42 }
  0x5d   :  { %735 = vmatprep.subr.bf16.mxu0 %v734_v48 }
  0x62   :  { %769 = vmatpush3.bf16.xpose.msra.mxu1 %v766_v47 }
  0x64   :  { %737 = vmatpush3.bf16.xpose.msra.mxu0 %v734_v48 }
  0x69   :  { %683 = vmatmul.mubr.f32.vlgmr.msra.gmra.mrb[0].mxu1 %v44_v49 }
  0x6a   :  { %685 = vmatprep.mubr.f32.mxu1 %v45_v50 }
  0x6b   :  { %627 = vmatmul.mubr.f32.vlgmr.msra.gmra.mrb[0].mxu0 %v44_v49 }
  0x6c   :  { %629 = vmatprep.mubr.f32.mxu0 %v45_v50 }
  0x6d   :  { %686 = vmatmul.mubr.f32.gmra.mrb[2].mxu1 %v46_v51 }
  0x6e   :  { %688 = vmatprep.mubr.f32.mxu1 %v47_v52 }
  0x6f   :  { %630 = vmatmul.mubr.f32.gmra.mrb[2].mxu0 %v46_v51 }
  0x70   :  { %632 = vmatprep.mubr.f32.mxu0 %v47_v52 }
  0x71   :  { %689 = vmatmul.mubr.f32.gmra.mrb[4].mxu1 %v48_v53 }
  0x72   :  { %691 = vmatprep.mubr.f32.mxu1 %v49_v54 }
  0x73   :  { %633 = vmatmul.mubr.f32.gmra.mrb[4].mxu0 %v48_v53 }
  0x74   :  { %635 = vmatprep.mubr.f32.mxu0 %v49_v54 }
  0x75   :  { %692 = vmatmul.mubr.f32.gmra.mrb[6].mxu1 %v50_v55 }
  0x76   :  { %694 = vmatprep.mubr.f32.mxu1 %v51_v56 }
  0x77   :  { %636 = vmatmul.mubr.f32.gmra.mrb[6].mxu0 %v50_v55 }
  0x78   :  { %638 = vmatprep.mubr.f32.mxu0 %v51_v56 }
  0x79   :  { %695 = vmatmul.mubr.f32.gmra.mrb[8].mxu1 %v52_v57 }
  0x7a   :  { %697 = vmatprep.mubr.f32.mxu1 %v53_v58 }
  0x7b   :  { %639 = vmatmul.mubr.f32.gmra.mrb[8].mxu0 %v52_v57 }
  0x7c   :  { %641 = vmatprep.mubr.f32.mxu0 %v53_v58 }
  0x7d   :  { %698 = vmatmul.mubr.f32.gmra.mrb[10].mxu1 %v54_v59 }
  0x7e   :  { %700 = vmatprep.mubr.f32.mxu1 %v55_v60 }
  0x7f   :  { %642 = vmatmul.mubr.f32.gmra.mrb[10].mxu0 %v54_v59 }
  0x80   :  { %644 = vmatprep.mubr.f32.mxu0 %v55_v60 }
  0x81   :  { %701 = vmatmul.mubr.f32.gmra.mrb[12].mxu1 %v56_v61 }
  0x82   :  { %703 = vmatprep.mubr.f32.mxu1 %v57_v62 }
  0x83   :  { %645 = vmatmul.mubr.f32.gmra.mrb[12].mxu0 %v56_v61 }
  0x84   :  { %647 = vmatprep.mubr.f32.mxu0 %v57_v62 }
  0x85   :  { %704 = vmatmul.mubr.f32.gmra.mrb[14].mxu1 %v58_v63 }
  0x87   :  { %648 = vmatmul.mubr.f32.gmra.mrb[14].mxu0 %v58_v63 }
 0x13c   :  { %v684_v1 = vpop.f32.mrb[0].mxu1 }
 0x13d   :  { %v324_v2 = vadd.f32 %v684_v1, %v937_v0  ;;  %v318_v3 = vpop.f32.mrb[1].mxu1 }
 0x13e   :  { %v628_v4 = vpop.f32.mrb[0].mxu0  ;;  %v319_v5 = vadd.f32 %v937_v0, %v318_v3 }
 0x13f   :  { %v148_v6 = vpop.f32.mrb[1].mxu0  ;;  %v414_v7 = vmul.f32 0.70710677, %v324_v2  ;;  %v154_v34 = vadd.f32 %v628_v4, %v951_v26  ;;  %v398_v36 = vmul.f32 0.5, %v324_v2 }
 0x140   :  { %v413_v8 = vmul.f32 0.70710677, %v319_v5  ;;  %v687_v9 = vpop.f32.mrb[2].mxu1  ;;  %v149_v40 = vadd.f32 %v951_v26, %v148_v6  ;;  %v397_v41 = vmul.f32 0.5, %v319_v5 }
 0x141   :  { %775 = verf.f32 %v414_v7  ;;  %v334_v10 = vadd.f32 %v687_v9, %v937_v0  ;;  %v328_v11 = vpop.f32.mrb[3].mxu1 }
 0x142   :  { %v631_v12 = vpop.f32.mrb[2].mxu0  ;;  %777 = verf.f32 %v413_v8  ;;  %v329_v13 = vadd.f32 %v937_v0, %v328_v11 }
 0x143   :  { %v158_v14 = vpop.f32.mrb[3].mxu0  ;;  %v416_v15 = vmul.f32 0.70710677, %v334_v10  ;;  %v164_v48 = vadd.f32 %v631_v12, %v951_v26  ;;  %v400_v51 = vmul.f32 0.5, %v334_v10 }
 0x144   :  { %v415_v16 = vmul.f32 0.70710677, %v329_v13  ;;  %v690_v17 = vpop.f32.mrb[4].mxu1  ;;  %v159_v54 = vadd.f32 %v951_v26, %v158_v14  ;;  %v399_v57 = vmul.f32 0.5, %v329_v13 }
 0x145   :  { %779 = verf.f32 %v416_v15  ;;  %v344_v18 = vadd.f32 %v690_v17, %v937_v0  ;;  %v338_v19 = vpop.f32.mrb[5].mxu1 }
 0x146   :  { %v634_v20 = vpop.f32.mrb[4].mxu0  ;;  %781 = verf.f32 %v415_v16  ;;  %v945_v21 = vadd.f32 %v937_v0, %v338_v19 }
 0x147   :  { %v168_v22 = vpop.f32.mrb[5].mxu0  ;;  %v418_v23 = vmul.f32 0.70710677, %v344_v18  ;;  %v174_v5 = vadd.f32 %v634_v20, %v951_v26  ;;  %v402_v8 = vmul.f32 0.5, %v344_v18 }
 0x148   :  { %v417_v24 = vmul.f32 0.70710677, %v945_v21  ;;  %v693_v25 = vpop.f32.mrb[6].mxu1  ;;  %v169_v11 = vadd.f32 %v951_v26, %v168_v22  ;;  %v401_v14 = vmul.f32 0.5, %v945_v21 }
 0x149   :  { %783 = verf.f32 %v418_v23  ;;  %v954_v27 = vadd.f32 %v693_v25, %v937_v0  ;;  %v348_v28 = vpop.f32.mrb[7].mxu1 }
 0x14a   :  { %v956_v29 = vpop.f32.mrb[6].mxu0  ;;  %785 = verf.f32 %v417_v24  ;;  %v959_v30 = vadd.f32 %v937_v0, %v348_v28 }
 0x14b   :  { %v961_v31 = vpop.f32.mrb[7].mxu0  ;;  %v776_v32 = vpop.eup %775  ;;  %v420_v33 = vmul.f32 0.70710677, %v954_v27  ;;  %v184_v21 = vadd.f32 %v956_v29, %v951_v26 }
 0x14c   :  { %v778_v35 = vpop.eup %777  ;;  %v446_v37 = vadd.f32 1.0, %v776_v32  ;;  %v419_v38 = vmul.f32 0.70710677, %v959_v30  ;;  %v696_v39 = vpop.f32.mrb[8].mxu1 }
 0x14d   :  { %v445_v42 = vadd.f32 1.0, %v778_v35  ;;  %787 = verf.f32 %v420_v33  ;;  %v968_v43 = vadd.f32 %v696_v39, %v937_v0  ;;  %v358_v44 = vpop.f32.mrb[9].mxu1  ;;  %v404_v33 = vmul.f32 0.5, %v954_v27 }
 0x14e   :  { %v970_v45 = vpop.f32.mrb[8].mxu0  ;;  %789 = verf.f32 %v419_v38  ;;  %v462_v46 = vmul.f32 %v446_v37, %v398_v36  ;;  %v973_v47 = vadd.f32 %v937_v0, %v358_v44  ;;  %v179_v36 = vadd.f32 %v951_v26, %v961_v31 }
 0x14f   :  { %v976_v49 = vpop.f32.mrb[9].mxu0  ;;  %v780_v50 = vpop.eup %779  ;;  %v422_v52 = vmul.f32 0.70710677, %v968_v43  ;;  %v461_v53 = vmul.f32 %v445_v42, %v397_v41  ;;  %v403_v39 = vmul.f32 0.5, %v959_v30  ;;  %v406_v30 = vmul.f32 0.5, %v968_v43 }
 0x150   :  { %v782_v55 = vpop.eup %781  ;;  %v448_v56 = vadd.f32 1.0, %v780_v50  ;;  %v478_v58 = vmul.f32 %v462_v46, %v154_v34  ;;  %v421_v59 = vmul.f32 0.70710677, %v973_v47  ;;  %v699_v60 = vpop.f32.mrb[10].mxu1 }
 0x151   :  { %v447_v61 = vadd.f32 1.0, %v782_v55  ;;  %791 = verf.f32 %v422_v52  ;;  %v477_v62 = vmul.f32 %v461_v53, %v149_v40  ;;  %v982_v63 = vadd.f32 %v699_v60, %v937_v0  ;;  %v368_v1 = vpop.f32.mrb[11].mxu1 }
 0x152   :  { %v984_v2 = vpop.f32.mrb[10].mxu0  ;;  %494 = vst [vmem:[#allocation7 + $0x8] sm:$0xff] %v478_v58  ;;  %793 = verf.f32 %v421_v59  ;;  %v464_v3 = vmul.f32 %v448_v56, %v400_v51  ;;  %v987_v4 = vadd.f32 %v937_v0, %v368_v1  ;;  %v194_v55 = vadd.f32 %v970_v45, %v951_v26 }
 0x153   :  { %v990_v6 = vpop.f32.mrb[11].mxu0  ;;  %v784_v7 = vpop.eup %783  ;;  %493 = vst [vmem:[#allocation7] sm:$0xff] %v477_v62  ;;  %v424_v9 = vmul.f32 0.70710677, %v982_v63  ;;  %v463_v10 = vmul.f32 %v447_v61, %v399_v57  ;;  %v189_v60 = vadd.f32 %v951_v26, %v976_v49  ;;  %v405_v61 = vmul.f32 0.5, %v973_v47 }
 0x154   :  { %v786_v12 = vpop.eup %785  ;;  %v450_v13 = vadd.f32 1.0, %v784_v7  ;;  %v480_v15 = vmul.f32 %v464_v3, %v164_v48  ;;  %v423_v16 = vmul.f32 0.70710677, %v987_v4  ;;  %v702_v17 = vpop.f32.mrb[12].mxu1  ;;  %v408_v45 = vmul.f32 0.5, %v982_v63 }
 0x155   :  { %v449_v19 = vadd.f32 1.0, %v786_v12  ;;  %795 = verf.f32 %v424_v9  ;;  %v479_v20 = vmul.f32 %v463_v10, %v159_v54  ;;  %v997_v23 = vadd.f32 %v702_v17, %v937_v0  ;;  %v378_v18 = vpop.f32.mrb[13].mxu1 }
 0x156   :  { %v999_v24 = vpop.f32.mrb[12].mxu0  ;;  %496 = vst [vmem:[#allocation7 + $0x18] sm:$0xff] %v480_v15  ;;  %797 = verf.f32 %v423_v16  ;;  %v466_v22 = vmul.f32 %v450_v13, %v402_v8  ;;  %v1002_v25 = vadd.f32 %v937_v0, %v378_v18  ;;  %v204_v9 = vadd.f32 %v984_v2, %v951_v26 }
 0x157   :  { %v1006_v28 = vpop.f32.mrb[13].mxu0  ;;  %v788_v32 = vpop.eup %787  ;;  %495 = vst [vmem:[#allocation7 + $0x10] sm:$0xff] %v479_v20  ;;  %v426_v34 = vmul.f32 0.70710677, %v997_v23  ;;  %v465_v35 = vmul.f32 %v449_v19, %v401_v14  ;;  %v407_v49 = vmul.f32 0.5, %v987_v4  ;;  %v410_v63 = vmul.f32 0.5, %v997_v23 }
 0x158   :  { %v790_v37 = vpop.eup %789  ;;  %v452_v38 = vadd.f32 1.0, %v788_v32  ;;  %v482_v40 = vmul.f32 %v466_v22, %v174_v5  ;;  %v425_v41 = vmul.f32 0.70710677, %v1002_v25  ;;  %v705_v29 = vpop.f32.mrb[14].mxu1  ;;  %v214_v2 = vadd.f32 %v999_v24, %v951_v26 }
 0x159   :  { %v451_v42 = vadd.f32 1.0, %v790_v37  ;;  %799 = verf.f32 %v426_v34  ;;  %v481_v44 = vmul.f32 %v465_v35, %v169_v11  ;;  %v394_v27 = vadd.f32 %v705_v29, %v937_v0  ;;  %v388_v46 = vpop.f32.mrb[15].mxu1 }
 0x15a   :  { %v649_v48 = vpop.f32.mrb[14].mxu0  ;;  %498 = vst [vmem:[#allocation7 + $0x28] sm:$0xff] %v482_v40  ;;  %801 = verf.f32 %v425_v41  ;;  %v468_v50 = vmul.f32 %v452_v38, %v404_v33  ;;  %v389_v31 = vadd.f32 %v937_v0, %v388_v46  ;;  %v199_v11 = vadd.f32 %v951_v26, %v990_v6 }
 0x15b   :  { %v218_v51 = vpop.f32.mrb[15].mxu0  ;;  %v792_v52 = vpop.eup %791  ;;  %497 = vst [vmem:[#allocation7 + $0x20] sm:$0xff] %v481_v44  ;;  %v428_v53 = vmul.f32 0.70710677, %v394_v27  ;;  %v467_v54 = vmul.f32 %v451_v42, %v403_v39  ;;  %v409_v4 = vmul.f32 0.5, %v1002_v25  ;;  %v209_v6 = vadd.f32 %v951_v26, %v1006_v28 }
 0x15c   :  { %v794_v56 = vpop.eup %793  ;;  %v454_v57 = vadd.f32 1.0, %v792_v52  ;;  %v484_v58 = vmul.f32 %v468_v50, %v184_v21  ;;  %v427_v59 = vmul.f32 0.70710677, %v389_v31  ;;  %v412_v33 = vmul.f32 0.5, %v394_v27 }
 0x15d   :  { %v453_v0 = vadd.f32 1.0, %v794_v56  ;;  %803 = verf.f32 %v428_v53  ;;  %v483_v62 = vmul.f32 %v467_v54, %v179_v36  ;;  %v224_v35 = vadd.f32 %v649_v48, %v951_v26 }
 0x15e   :  { %500 = vst [vmem:[#allocation7 + $0x38] sm:$0xff] %v484_v58  ;;  %805 = verf.f32 %v427_v59  ;;  %v470_v43 = vmul.f32 %v454_v57, %v406_v30  ;;  %v411_v36 = vmul.f32 0.5, %v389_v31  ;;  %v219_v25 = vadd.f32 %v951_v26, %v218_v51 }
 0x15f   :  { %v796_v1 = vpop.eup %795  ;;  %499 = vst [vmem:[#allocation7 + $0x30] sm:$0xff] %v483_v62  ;;  %v469_v3 = vmul.f32 %v453_v0, %v405_v61 }
 0x160   :  { %v798_v5 = vpop.eup %797  ;;  %v456_v7 = vadd.f32 1.0, %v796_v1  ;;  %v486_v8 = vmul.f32 %v470_v43, %v194_v55 }
 0x161   :  { %v455_v47 = vadd.f32 1.0, %v798_v5  ;;  %v485_v10 = vmul.f32 %v469_v3, %v189_v60 }
 0x162   :  { %502 = vst [vmem:[#allocation7 + $0x48] sm:$0xff] %v486_v8  ;;  %v472_v12 = vmul.f32 %v456_v7, %v408_v45 }
 0x163   :  { %v800_v13 = vpop.eup %799  ;;  %501 = vst [vmem:[#allocation7 + $0x40] sm:$0xff] %v485_v10  ;;  %v471_v14 = vmul.f32 %v455_v47, %v407_v49 }
 0x164   :  { %v802_v15 = vpop.eup %801  ;;  %v458_v16 = vadd.f32 1.0, %v800_v13  ;;  %v488_v17 = vmul.f32 %v472_v12, %v204_v9 }
 0x165   :  { %v457_v19 = vadd.f32 1.0, %v802_v15  ;;  %v487_v20 = vmul.f32 %v471_v14, %v199_v11 }
 0x166   :  { %504 = vst [vmem:[#allocation7 + $0x58] sm:$0xff] %v488_v17  ;;  %v474_v18 = vmul.f32 %v458_v16, %v410_v63 }
 0x167   :  { %v804_v22 = vpop.eup %803  ;;  %503 = vst [vmem:[#allocation7 + $0x50] sm:$0xff] %v487_v20  ;;  %v473_v21 = vmul.f32 %v457_v19, %v409_v4 }
 0x168   :  { %v806_v32 = vpop.eup %805  ;;  %v460_v23 = vadd.f32 1.0, %v804_v22  ;;  %v490_v34 = vmul.f32 %v474_v18, %v214_v2 }
 0x169   :  { %v459_v24 = vadd.f32 1.0, %v806_v32  ;;  %v489_v37 = vmul.f32 %v473_v21, %v209_v6 }
 0x16a   :  { %506 = vst [vmem:[#allocation7 + $0x68] sm:$0xff] %v490_v34  ;;  %v476_v38 = vmul.f32 %v460_v23, %v412_v33 }
 0x16b   :  { %505 = vst [vmem:[#allocation7 + $0x60] sm:$0xff] %v489_v37  ;;  %v475_v28 = vmul.f32 %v459_v24, %v411_v36 }
 0x16c   :  { %v492_v39 = vmul.f32 %v476_v38, %v224_v35 }
 0x16d   :  { %v491_v40 = vmul.f32 %v475_v28, %v219_v25 }
 0x16e   :  { %508 = vst [vmem:[#allocation7 + $0x78] sm:$0xff] %v492_v39 }
 0x16f   :  { %507 = vst [vmem:[#allocation7 + $0x70] sm:$0xff] %v491_v40 }
 0x170   :  { %862 = shalt.err (!%p859_p6)
}
 0x171   :  { %s863_s17 = scalar_lea.hbm %s1054_s3, 2048 }
 0x172   :  { %p864_p7 = scmp.ne.s32.totalorder %s1054_s3, %s863_s17  ;;  %p867_p8 = scmp.lt.u32.totalorder %s863_s17, %s1054_s3 }
 0x174   :  { %p869_p9 = pnand %p867_p8, %p864_p7 }
 0x176   :  { %872 = shalt.err (!%p869_p9)
}
 0x177   :  { %520 = dma.vmem_to_hbm [thread:$0]  %s515_s13, 2048, %s1054_s3, [#allocation4], %s880_s22, %s880_s22, %s881_s23  }
 0x178   :  { %877 = dma.done.wait [#allocation4], 2048  }
 0x179   :  { %878 = vsyncadd [#allocation4], 4294965248 }
 0x17a   :  { %524 = vsyncpa [#allocation3], 1 }
 0x17b   :  { %525 = vsyncpa [#allocation6], 1 }
 0x17c   :  { %526 = vsyncpa [#allocation4], 1 }

</bundles_post_ra>
